<compile_context>
chip_gen: v7x
topology: tpu7x:2x2x1
jax: 0.10.0
libtpu: 0.0.40
codegen_flags: <defaults>
</compile_context>

<pallas_src>
import functools

import numpy as np
import jax
import jax.numpy as jnp
from jax import lax
from jax.experimental import pallas as pl
from jax.experimental.pallas import tpu as pltpu

SUB = 8      # sublane granule (f32)
LANE = 128   # lane width of every tile

R_CONST = -1.0 / 0.008314


# ----------------------------------------------------------------------------- kernels
def _crnn_single_kernel(in_ref, w_inT_ref, w_outT_ref, out_ref, *, S, K, lb):
    """Single RHS evaluation (gridless, all-VMEM).

    in_ref     : (1, LANE)    row = [raw x (S) | R/T | hyp_T*lnT | ocen | 0...]
    w_inT_ref  : (RPAD, LANE) row r = w_in[:, r] in lanes [0:K), w_b[r] at lane K, else 0
    w_outT_ref : (RPAD, LANE) row r = w_out[:, r] in lanes [0:S), else 0
    out_ref    : (1, LANE)    row 0 = du3 (lanes [0:S) valid)
    """
    lane_n = out_ref.shape[-1]
    lane = lax.broadcasted_iota(jnp.int32, (1, lane_n), 1)
    row = in_ref[...]                                              # (1, LANE)
    is_x = lane < S
    xraw = jnp.where(is_x, row, 0.0)                               # unclamped x (pad lanes 0)
    inp = jnp.where(is_x, jnp.log(jnp.clip(row, lb, 10.0)), row)   # log only on species lanes
    inp = jnp.where(lane == K, 1.0, inp)                           # bias lane (pairs with folded w_b)

    # stage 1: z[r] = w_in[:, r] . input + w_b[r]     (lane contraction, bias folded)
    z = jnp.sum(inp * w_inT_ref[...], axis=-1, keepdims=True)      # (RPAD, 1)
    rate = jnp.exp(z)                                              # pad rows -> exp(0)=1, killed below

    # stage 2: du1[s] = sum_r rate[r] * w_out[s, r]   (sublane contraction; w_outT pad rows are 0)
    du1 = jnp.sum(rate * w_outT_ref[...], axis=0, keepdims=True)   # (1, LANE)

    logic = (xraw <= lb) & (du1 < 0.0)                             # pad lanes: du1 == 0 -> False
    du2 = jnp.where(logic, 0.0, du1)
    last_mask = lane == (S - 1)

    # merged single cross-lane reduction for (temp, last_val)
    rowsel = lax.broadcasted_iota(jnp.int32, (2, lane_n), 0)
    stacked = jnp.where(rowsel == 0,
                        jnp.abs(jnp.where(logic, du1, 0.0)),
                        jnp.where(last_mask, du2, 0.0))            # (2, LANE)
    red = jnp.sum(stacked, axis=-1, keepdims=True)                 # (2, 1)
    temp, last_val = red[0:1, :], red[1:2, :]
    # if temp <= du2[-1]: du2[-1] -= temp  else: du2[-1] = 0
    new_last = jnp.where(temp <= last_val, last_val - temp, 0.0)
    out_ref[...] = jnp.where(last_mask, new_last, du2)             # single lane-dense row store


def _crnn_batch_kernel(in_ref, w_inT_ref, w_outT_ref, out_ref, *, S, K, Rn, lb):
    """Batched RHS: one (block_rows, LANE) block of independent evaluations per grid step."""
    rows, lane_n = out_ref.shape
    lane = lax.broadcasted_iota(jnp.int32, (rows, lane_n), 1)
    raw = in_ref[...]
    is_x = lane < S
    xraw = jnp.where(is_x, raw, 0.0)
    inp = jnp.where(is_x, jnp.log(jnp.clip(raw, lb, 10.0)), raw)
    inp = jnp.where(lane == K, 1.0, inp)                           # bias lane for every row

    # Rn <= 8: exact-f32 VPU/XLU contraction, statically unrolled over relations.
    du1 = jnp.zeros((rows, lane_n), jnp.float32)
    for r in range(Rn):
        z_r = jnp.sum(inp * w_inT_ref[r:r + 1, :], axis=-1, keepdims=True)   # (rows, 1)
        du1 = du1 + jnp.exp(z_r) * w_outT_ref[r:r + 1, :]                    # (rows, LANE)

    logic = (xraw <= lb) & (du1 < 0.0)
    du2 = jnp.where(logic, 0.0, du1)
    last_mask = lane == (S - 1)
    temp = jnp.sum(jnp.abs(jnp.where(logic, du1, 0.0)), axis=-1, keepdims=True)   # (rows, 1)
    last_val = jnp.sum(jnp.where(last_mask, du2, 0.0), axis=-1, keepdims=True)    # (rows, 1)
    new_last = jnp.where(temp <= last_val, last_val - temp, 0.0)
    out_ref[...] = jnp.where(last_mask, new_last, du2)


# ----------------------------------------------------------------------------- glue (plain JAX)
def interp1d_linear_extrap(tq, tg, yg):
    """scipy.interpolate.interp1d(kind='slinear', fill_value='extrapolate') equivalent."""
    idx = jnp.clip(jnp.searchsorted(tg, tq, side="right") - 1, 0, tg.shape[0] - 2)
    t0, t1 = tg[idx], tg[idx + 1]
    y0, y1 = yg[idx], yg[idx + 1]
    return y0 + (y1 - y0) * (tq - t0) / (t1 - t0)


_VMEM_SPEC = pl.BlockSpec(memory_space=pltpu.MemorySpace.VMEM)


@functools.partial(jax.jit, static_argnames=("S", "K", "lb"))
def _crnn_forward_jit(t, x, t_grid, temp_grid, hyp_T, ocen, hyp_ocen,
                      w_inT_tile, w_outT_tile, *, S, K, lb):
    """Single-evaluation forward: interp + packing + gridless Pallas kernel + slice."""
    xorgin = x.reshape(-1).astype(jnp.float32)                     # (S,)
    T = interp1d_linear_extrap(t, t_grid, temp_grid)               # scalar
    scal = jnp.stack([R_CONST / T, hyp_T * jnp.log(T),
                      jnp.log(ocen * jnp.abs(hyp_ocen)).reshape(())])        # (3,)
    in_row = jnp.concatenate(
        [xorgin, scal.astype(jnp.float32),
         jnp.zeros((LANE - K,), jnp.float32)])[None, :]            # (1, LANE)

    out_row = pl.pallas_call(
        functools.partial(_crnn_single_kernel, S=S, K=K, lb=lb),
        out_shape=jax.ShapeDtypeStruct((1, LANE), jnp.float32),
        in_specs=[_VMEM_SPEC, _VMEM_SPEC, _VMEM_SPEC],
        out_specs=_VMEM_SPEC,
    )(in_row, w_inT_tile, w_outT_tile)
    return out_row[0, :S][None, :]                                 # du3.squeeze().unsqueeze(0)


@functools.partial(jax.jit, static_argnames=("S", "K", "Rn", "lb", "block_rows"))
def _crnn_forward_batch_jit(ts, xs, t_grid, temp_grid, hyp_T, ocen, hyp_ocen,
                            w_inT_tile, w_outT_tile, *, S, K, Rn, lb, block_rows):
    """B independent RHS evaluations behind ONE pallas_call (dispatch/DMA amortized)."""
    B = xs.shape[0]
    xs = xs.reshape(B, -1).astype(jnp.float32)
    T = interp1d_linear_extrap(ts.reshape(B), t_grid, temp_grid)             # (B,)
    ocen_term = jnp.log(ocen * jnp.abs(hyp_ocen)).reshape(())
    scal = jnp.stack([R_CONST / T, hyp_T * jnp.log(T),
                      jnp.broadcast_to(ocen_term, T.shape)], axis=-1)        # (B, 3)
    rows_k = jnp.concatenate([xs, scal.astype(jnp.float32)], axis=1)         # (B, K)
    BPAD = ((B + block_rows - 1) // block_rows) * block_rows
    in_tile = jnp.zeros((BPAD, LANE), jnp.float32).at[:B, :K].set(rows_k)

    out = pl.pallas_call(
        functools.partial(_crnn_batch_kernel, S=S, K=K, Rn=Rn, lb=lb),
        out_shape=jax.ShapeDtypeStruct((BPAD, LANE), jnp.float32),
        grid=(BPAD // block_rows,),
        in_specs=[pl.BlockSpec((block_rows, LANE), lambda i: (i, 0)),
                  pl.BlockSpec(w_inT_tile.shape, lambda i: (0, 0)),   # VMEM-resident weights
                  pl.BlockSpec(w_outT_tile.shape, lambda i: (0, 0))],
        out_specs=pl.BlockSpec((block_rows, LANE), lambda i: (i, 0)),
        compiler_params=pltpu.CompilerParams(dimension_semantics=("parallel",)),
    )(in_tile, w_inT_tile, w_outT_tile)
    return out[:B, :S]


class CRNNPallas:
    def __init__(self, relation_nums, source_nums, p_cutoff, lb, key):
        self.relation_nums = relation_nums
        self.source_nums = source_nums
        self.p_cutoff = p_cutoff
        self.lb = lb
        k1, k2 = jax.random.split(key)
        n_p = (source_nums + 4) * relation_nums + 1
        data_p = jax.random.normal(k1, (n_p,), dtype=jnp.float32) * 0.01
        data_p = data_p.at[-1].set(0.15)
        data_p = data_p.at[0:relation_nums].add(0.8)
        data_p = data_p.at[relation_nums * (source_nums + 1):relation_nums * (source_nums + 2)].add(0.8)
        data_p = data_p.at[relation_nums * (source_nums + 2):relation_nums * (source_nums + 3)].add(0.1)
        data_p = data_p.at[relation_nums * (source_nums + 3):relation_nums * (source_nums + 4)].add(0.1)
        self.data_p = data_p
        self.hyp_ocen = jax.random.uniform(k2, (1,), dtype=jnp.float32)
        self.hyp_T = jnp.float32(4.0)
        self.R = R_CONST
        self.xiu = True
        self.xiu2 = False
        # TODO(synk): nn.Dropout(0.5) is defined in __init__ but unused in forward; omitted.

    # ---- parameter preprocessing (mirrors init_w_* / init_state) ----
    def _init_w_out(self, w_out):
        S = self.source_nums
        w_out0 = jnp.clip(w_out[0, :], -3.0, 0.0)[None, :]
        w_out_last = jnp.clip(jnp.abs(w_out[-1, :]), 0.0, 3.0)[None, :]
        w_out_update = jnp.concatenate([w_out0, w_out[1:-1, :], w_out_last], axis=0)
        if self.p_cutoff > 0.0:
            w_out_update = jnp.where(jnp.abs(w_out_update) < self.p_cutoff, 0.0, w_out_update)
        w_out_slastsecond = -jnp.sum(w_out_update[0:S - 2, :], axis=0) - w_out_update[S - 1, :]
        w_out_update2 = jnp.concatenate(
            [w_out_update[0:S - 2, :], w_out_slastsecond[None, :], w_out_update[S - 1, :][None, :]], axis=0)
        if self.p_cutoff > 0.0:
            w_out_update2 = jnp.where(jnp.abs(w_out_update2) < 0.0006, 0.0, w_out_update2)
        w_out1 = jnp.clip(jnp.abs(w_out[1:, 0:2]), 0.0, 3.0)
        w_out1_lib = -jnp.sum(w_out1, axis=0)[None, :]
        w_out1 = jnp.concatenate((w_out1_lib, w_out1), axis=0)
        return jnp.concatenate((w_out1, w_out_update2[:, 2:]), axis=1)

    def init_state(self, ini_state, t_grid, temp_grid):
        Rn, S = self.relation_nums, self.source_nums
        K = S + 3
        assert K + 1 <= LANE and S <= LANE and Rn <= LANE
        self.T0, self.beta, self.ocen = ini_state
        slope = self.data_p[-1] * 10.0
        w_b = self.data_p[0:Rn]
        w_in_Ea = self.data_p[Rn * (S + 1):Rn * (S + 2)]
        w_in_b = self.data_p[Rn * (S + 2):Rn * (S + 3)]
        w_in_ocen = self.data_p[Rn * (S + 3):Rn * (S + 4)]
        w_out = self.data_p[Rn:Rn * (S + 1)].reshape(Rn, S).swapaxes(0, 1)  # (S, Rn)

        self.w_b = jnp.clip(w_b * slope * 10.0, 0.0, 50.0)
        self.w_in_Ea = jnp.clip(jnp.abs(w_in_Ea) * (slope * 100.0), 40.0, 300.0)
        self.w_in_b = jnp.abs(w_in_b)
        w_in_ocen = jnp.clip(jnp.abs(w_in_ocen), 0.0, 1.5)
        if self.p_cutoff > 0.0:
            w_in_ocen = jnp.where(jnp.abs(w_in_ocen) < self.p_cutoff, 0.0, w_in_ocen)
        self.w_in_ocen = w_in_ocen
        self.w_out = self._init_w_out(w_out)

        # w_in (K, Rn) is fixed after init_state
        self.w_in = jnp.concatenate(
            [jnp.clip(-self.w_out, 0.0, 10.0),
             self.w_in_Ea[None, :], self.w_in_b[None, :], self.w_in_ocen[None, :]], axis=0)

        # Zero-padded kernel weight tiles built ONCE.  Bias folded: column K of w_inT
        # holds w_b (the kernels set input lane K to 1.0).
        RPAD = ((Rn + SUB - 1) // SUB) * SUB
        w_in_ext = jnp.concatenate([self.w_in, self.w_b[None, :]], axis=0)   # (K+1, Rn)
        self.w_inT_tile = jnp.zeros((RPAD, LANE), jnp.float32).at[:Rn, :K + 1].set(w_in_ext.T)
        self.w_outT_tile = jnp.zeros((RPAD, LANE), jnp.float32).at[:Rn, :S].set(self.w_out.T)

        self.t_grid = jnp.asarray(t_grid, jnp.float32)
        self.temp_grid = jnp.asarray(temp_grid, jnp.float32)

    # ---- forward (module semantics: one (t, x) evaluation) ----
    def forward(self, t, x):
        # TODO(synk): host-side NaN assertions (isnan + raise) and the unused xiu2 branch are omitted.
        return _crnn_forward_jit(
            jnp.asarray(t, jnp.float32), jnp.asarray(x, jnp.float32),
            self.t_grid, self.temp_grid, self.hyp_T, self.ocen, self.hyp_ocen,
            self.w_inT_tile, self.w_outT_tile,
            S=self.source_nums, K=self.source_nums + 3, lb=float(self.lb))

    # ---- batched forward (RK stages / ensembles): B evaluations, one dispatch ----
    def forward_batch(self, ts, xs, block_rows=8):
        return _crnn_forward_batch_jit(
            jnp.asarray(ts, jnp.float32), jnp.asarray(xs, jnp.float32),
            self.t_grid, self.temp_grid, self.hyp_T, self.ocen, self.hyp_ocen,
            self.w_inT_tile, self.w_outT_tile,
            S=self.source_nums, K=self.source_nums + 3, Rn=self.relation_nums,
            lb=float(self.lb), block_rows=block_rows)

    def forward_reference(self, t, x):
        """Pure-JAX (unpadded, elementwise f32) reference of the same math, for verification."""
        xorgin = jnp.asarray(x, jnp.float32).reshape(-1)
        logx = jnp.log(jnp.clip(xorgin, self.lb, 10.0))
        T = interp1d_linear_extrap(jnp.asarray(t, jnp.float32), self.t_grid, self.temp_grid)
        ocen_update = jnp.log(self.ocen * jnp.abs(self.hyp_ocen)).reshape(1)
        input_x = jnp.concatenate([logx, jnp.reshape(R_CONST / T, (1,)),
                                   jnp.reshape(self.hyp_T * jnp.log(T), (1,)), ocen_update])
        w_in_x = jnp.sum(self.w_in * input_x[:, None], axis=0)          # (Rn,)
        w_in_x2 = jnp.exp(w_in_x + self.w_b)                            # (Rn,)
        du1 = jnp.sum(self.w_out * w_in_x2[None, :], axis=1)            # (S,)
        logic = (xorgin <= self.lb) & (du1 < 0.0)
        temp = jnp.sum(jnp.abs(jnp.where(logic, du1, 0.0)))
        du2 = jnp.where(logic, 0.0, du1)
        new_last = jnp.where(temp <= du2[-1], du2[-1] - temp, 0.0)
        du3 = du2.at[-1].set(new_last)
        return du3[None, :]


# ----------------------------------------------------------------------------- main
if __name__ == "__main__":
    relation_nums = 8
    source_nums = 6
    p_cutoff = 0.0
    lb = 1e-5

    key = jax.random.PRNGKey(0)
    k_model, k_x, k_xb, k_tb = jax.random.split(key, 4)

    model = CRNNPallas(relation_nums, source_nums, p_cutoff, lb, k_model)

    # init_state inputs: ini_state = (T0, beta, ocen), plus a (t, temperature) profile
    n_profile = 16
    t_grid = jnp.linspace(0.0, 10.0, n_profile, dtype=jnp.float32)
    temp_grid = 300.0 + 5.0 * t_grid
    model.init_state((jnp.float32(300.0), jnp.float32(10.0), jnp.float32(0.21)),
                     t_grid, temp_grid)

    # ---- single-evaluation forward (module semantics) ----
    t_query = jnp.float32(3.7)
    x = jax.random.uniform(k_x, (1, source_nums), dtype=jnp.float32,
                           minval=0.01, maxval=1.0)
    du_kernel = jax.block_until_ready(model.forward(t_query, x))
    du_ref = jax.block_until_ready(model.forward_reference(t_query, x))
    assert du_kernel.shape == (1, source_nums)
    tol = 1e-4 * float(np.max(np.abs(np.asarray(du_ref)))) + 1e-30
    np.testing.assert_allclose(np.asarray(du_kernel), np.asarray(du_ref),
                               rtol=1e-3, atol=tol)

    # ---- batched forward (amortized dispatch; "parallel" batch axis for v7x) ----
    B = 16
    ts = jax.random.uniform(k_tb, (B,), dtype=jnp.float32, minval=0.0, maxval=10.0)
    xs = jax.random.uniform(k_xb, (B, source_nums), dtype=jnp.float32,
                            minval=0.01, maxval=1.0)
    xs = xs.at[3, 2].set(1e-7)   # exercise the x <= lb clamping-correction path
    du_batch = jax.block_until_ready(model.forward_batch(ts, xs))
    du_batch_ref = jax.block_until_ready(
        jax.vmap(lambda tt, xx: model.forward_reference(tt, xx)[0])(ts, xs))
    assert du_batch.shape == (B, source_nums)
    tol_b = 1e-4 * float(np.max(np.abs(np.asarray(du_batch_ref)))) + 1e-30
    np.testing.assert_allclose(np.asarray(du_batch), np.asarray(du_batch_ref),
                               rtol=2e-3, atol=tol_b)

    print("KERNEL_OK")
</pallas_src>

<mosaic_0001>
module attributes {stable_mosaic.version = 11 : i64} {
  func.func @_crnn_single_kernel(%arg0: memref<1x128xf32, #tpu.memory_space<vmem>>, %arg1: memref<8x128xf32, #tpu.memory_space<vmem>>, %arg2: memref<8x128xf32, #tpu.memory_space<vmem>>, %arg3: memref<1x128xf32, #tpu.memory_space<vmem>>) attributes {dimension_semantics = [], scalar_prefetch = 0 : i64, scratch_operands = 0 : i64, tpu.core_type = #tpu.core_type<tc>} {
    %0 = tpu.iota {dimensions = array<i32: 1>} : vector<1x128xi32>
    %c0 = arith.constant 0 : index
    %c0_0 = arith.constant 0 : index
    %1 = vector.load %arg0[%c0, %c0_0] : memref<1x128xf32, #tpu.memory_space<vmem>>, vector<1x128xf32>
    %c6_i32 = arith.constant 6 : i32
    %2 = vector.broadcast %c6_i32 : i32 to vector<1x128xi32>
    %3 = arith.cmpi slt, %0, %2 : vector<1x128xi32>
    %cst = arith.constant 0.000000e+00 : f32
    %4 = vector.broadcast %cst : f32 to vector<1x128xf32>
    %5 = arith.select %3, %1, %4 : vector<1x128xi1>, vector<1x128xf32>
    %cst_1 = arith.constant 9.99999974E-6 : f32
    %cst_2 = arith.constant 1.000000e+01 : f32
    %6 = vector.broadcast %cst_1 : f32 to vector<1x128xf32>
    %7 = arith.maximumf %6, %1 : vector<1x128xf32>
    %8 = vector.broadcast %cst_2 : f32 to vector<1x128xf32>
    %9 = arith.minimumf %8, %7 : vector<1x128xf32>
    %10 = math.log %9 : vector<1x128xf32>
    %11 = arith.select %3, %10, %1 : vector<1x128xi1>, vector<1x128xf32>
    %c9_i32 = arith.constant 9 : i32
    %12 = vector.broadcast %c9_i32 : i32 to vector<1x128xi32>
    %13 = arith.cmpi eq, %0, %12 : vector<1x128xi32>
    %cst_3 = arith.constant 1.000000e+00 : f32
    %14 = vector.broadcast %cst_3 : f32 to vector<1x128xf32>
    %15 = arith.select %13, %14, %11 : vector<1x128xi1>, vector<1x128xf32>
    %c0_4 = arith.constant 0 : index
    %c0_5 = arith.constant 0 : index
    %16 = vector.load %arg1[%c0_4, %c0_5] : memref<8x128xf32, #tpu.memory_space<vmem>>, vector<8x128xf32>
    %17 = vector.broadcast %15 : vector<1x128xf32> to vector<8x128xf32>
    %18 = arith.mulf %17, %16 : vector<8x128xf32>
    %cst_6 = arith.constant dense<0.000000e+00> : vector<8xf32>
    %19 = vector.multi_reduction <add>, %18, %cst_6 [1] : vector<8x128xf32> to vector<8xf32>
    %20 = vector.shape_cast %19 : vector<8xf32> to vector<8x1xf32>
    %21 = math.exp %20 : vector<8x1xf32>
    %c0_7 = arith.constant 0 : index
    %c0_8 = arith.constant 0 : index
    %22 = vector.load %arg2[%c0_7, %c0_8] : memref<8x128xf32, #tpu.memory_space<vmem>>, vector<8x128xf32>
    %23 = vector.broadcast %21 : vector<8x1xf32> to vector<8x128xf32>
    %24 = arith.mulf %23, %22 : vector<8x128xf32>
    %cst_9 = arith.constant dense<0.000000e+00> : vector<128xf32>
    %25 = vector.multi_reduction <add>, %24, %cst_9 [0] : vector<8x128xf32> to vector<128xf32>
    %26 = vector.shape_cast %25 : vector<128xf32> to vector<1x128xf32>
    %cst_10 = arith.constant 9.99999974E-6 : f32
    %27 = vector.broadcast %cst_10 : f32 to vector<1x128xf32>
    %28 = arith.cmpf ole, %5, %27 : vector<1x128xf32>
    %cst_11 = arith.constant 0.000000e+00 : f32
    %29 = vector.broadcast %cst_11 : f32 to vector<1x128xf32>
    %30 = arith.cmpf olt, %26, %29 : vector<1x128xf32>
    %31 = arith.andi %28, %30 : vector<1x128xi1>
    %cst_12 = arith.constant 0.000000e+00 : f32
    %32 = vector.broadcast %cst_12 : f32 to vector<1x128xf32>
    %33 = arith.select %31, %32, %26 : vector<1x128xi1>, vector<1x128xf32>
    %c5_i32 = arith.constant 5 : i32
    %34 = vector.broadcast %c5_i32 : i32 to vector<1x128xi32>
    %35 = arith.cmpi eq, %0, %34 : vector<1x128xi32>
    %36 = tpu.iota {dimensions = array<i32: 0>} : vector<2x128xi32>
    %c0_i32 = arith.constant 0 : i32
    %37 = vector.broadcast %c0_i32 : i32 to vector<2x128xi32>
    %38 = arith.cmpi eq, %36, %37 : vector<2x128xi32>
    %cst_13 = arith.constant 0.000000e+00 : f32
    %39 = vector.broadcast %cst_13 : f32 to vector<1x128xf32>
    %40 = arith.select %31, %26, %39 : vector<1x128xi1>, vector<1x128xf32>
    %41 = math.absf %40 : vector<1x128xf32>
    %cst_14 = arith.constant 0.000000e+00 : f32
    %42 = vector.broadcast %cst_14 : f32 to vector<1x128xf32>
    %43 = arith.select %35, %33, %42 : vector<1x128xi1>, vector<1x128xf32>
    %44 = vector.shape_cast %41 : vector<1x128xf32> to vector<1x128xf32>
    %45 = vector.broadcast %44 : vector<1x128xf32> to vector<2x128xf32>
    %46 = vector.shape_cast %43 : vector<1x128xf32> to vector<1x128xf32>
    %47 = vector.broadcast %46 : vector<1x128xf32> to vector<2x128xf32>
    %48 = arith.select %38, %45, %47 : vector<2x128xi1>, vector<2x128xf32>
    %cst_15 = arith.constant dense<0.000000e+00> : vector<2xf32>
    %49 = vector.multi_reduction <add>, %48, %cst_15 [1] : vector<2x128xf32> to vector<2xf32>
    %50 = vector.shape_cast %49 : vector<2xf32> to vector<2x1xf32>
    %51 = vector.extract_strided_slice %50 {offsets = [0, 0], sizes = [1, 1], strides = [1, 1]} : vector<2x1xf32> to vector<1x1xf32>
    %52 = vector.extract_strided_slice %50 {offsets = [1, 0], sizes = [1, 1], strides = [1, 1]} : vector<2x1xf32> to vector<1x1xf32>
    %53 = arith.cmpf ole, %51, %52 : vector<1x1xf32>
    %54 = arith.subf %52, %51 : vector<1x1xf32>
    %cst_16 = arith.constant 0.000000e+00 : f32
    %55 = vector.broadcast %cst_16 : f32 to vector<1x1xf32>
    %56 = arith.select %53, %54, %55 : vector<1x1xi1>, vector<1x1xf32>
    %57 = vector.shape_cast %56 : vector<1x1xf32> to vector<1x1xf32>
    %58 = vector.broadcast %57 : vector<1x1xf32> to vector<1x128xf32>
    %59 = arith.select %35, %58, %33 : vector<1x128xi1>, vector<1x128xf32>
    %c0_17 = arith.constant 0 : index
    %c0_18 = arith.constant 0 : index
    %60 = vector.load %arg3[%c0_17, %c0_18] : memref<1x128xf32, #tpu.memory_space<vmem>>, vector<1x128xf32>
    tpu.vector_store %arg3[%c0_17, %c0_18], %59 {strides = array<i32>} : memref<1x128xf32, #tpu.memory_space<vmem>>, vector<1x128xf32>,
    return
  }
}

</mosaic_0001>

<bundles_post_ra>
// kernel: _crnn_forward_jit.1
= control target key start
LH: loop header
LB: loop body
LE: loop exit
PB: predicated region body
PF: predicated region fallthrough
CT: control target
= control target key end

     0   :  { %v15_v0 = vlaneseq  ;;  %s178_s0 = inlined_call_operand.vmem [shape: f32[1,128], index: 0, kind: input, shape index: {}]   ;;  %s179_s1 = inlined_call_operand.vmem [shape: f32[8,128], index: 1, kind: input, shape index: {}]   ;;  %s180_s2 = inlined_call_operand.vmem [shape: f32[8,128], index: 2, kind: input, shape index: {}]   ;;  %s181_s3 = inlined_call_operand.hbm [shape: f32[1,128], index: 3, kind: output, shape index: {}]  }
   0x1   :  { %v17_v1 = vld [vmem:[%s178_s0] sm:$0x1] }
   0x2   :  { %v20_v2 = vmax.f32 %v17_v1, 1e-05 }
   0x3   :  { %8 = vsyncpa [#allocation3], 0  ;;  %v16_v3 = vand.u32 127, %v15_v0  ;;  %v29_v6 = vshrl.u32 %v15_v0, 7  ;;  %v27_v12 = vld [vmem:[%s179_s1] sm:$0xff]  ;;  %vm65_vm7 = vcmask 1041408  }
   0x4   :  { %v21_v4 = vmin.f32 %v20_v2, 10.0  ;;  %v37_v17 = vld [vmem:[%s180_s2] sm:$0xff]  ;;  %v133_v34 = vmov 0   ;;  %s134_s1 = smov [#allocation2]  }
   0x5   :  { %vm18_vm0 = vcmp.lt.s32.totalorder %v16_v3, 6  ;;  %vm25_vm1 = vcmp.eq.s32.totalorder %v16_v3, 9  ;;  %v30_v9 = vsub.s32 0, %v29_v6  ;;  %vm49_vm4 = vcmp.eq.s32.totalorder %v16_v3, 5  ;;  %103 = vset.pattern.permute.xlu1 %v133_v34  ;;  %104 = vset.pattern.permute.xlu0 %v133_v34  ;;  %s93_s2 = sshll.u32 %s134_s1, 4  ;;  %s94_s2 = int_to_ptr.vmem [resolvable:$true] %s93_s2 }
   0x6   :  { %105 = vlog2.f32 %v21_v4  ;;  %v19_v5 = vsel %vm18_vm0, %v17_v1, 0.0  ;;  %vm52_vm6 = vcmp.eq.s32.totalorder %v29_v6, 0  ;;  %s109_s17 = scalar_lea.vmem %s94_s2, 16  ;;  %s113_s18 = scalar_lea.vmem %s94_s2, 32 }
   0x7   :  { %vm45_vm2 = vcmp.le.f32.partialorder %v19_v5, 1e-05  ;;  %p110_p0 = scmp.ne.s32.totalorder %s94_s2, %s109_s17  ;;  %p114_p1 = scmp.lt.s32.totalorder %s94_s2, %s94_s2 }
   0x8   :  { %p115_p2 = scmp.lt.s32.totalorder %s113_s18, %s109_s17 }
   0xa   :  { %p116_p3 = por %p115_p2, %p114_p1 }
   0xc   :  { %p117_p4 = pnand %p116_p3, %p110_p0 }
  0x10   :  { %v106_v7 = vpop.eup %105 }
  0x11   :  { %v23_v8 = vmul.f32 0.6931472, %v106_v7 }
  0x13   :  { %v24_v10 = vsel %vm18_vm0, %v23_v8, %v17_v1 }
  0x14   :  { %v26_v11 = vsel %vm25_vm1, 1.0, %v24_v10 }
  0x15   :  { %v31_v13 = vrot.slane %v26_v11, %v30_v9 }
  0x17   :  { %v32_v14 = vmul.f32 %v31_v13, %v27_v12 }
  0x19   :  { %33 = vadd.xlane.f32.xlu0 %v32_v14 }
  0xa6   :  { %v34_v15 = vpop.xlane.xlu0 %33 }
  0xa7   :  { %v35_v16 = vmul.f32 1.442695, %v34_v15 }
  0xa9   :  { %107 = vpow2.f32 %v35_v16 }
  0xb3   :  { %v108_v18 = vpop.eup %107 }
  0xb4   :  { %v38_v19 = vmul.f32 %v108_v18, %v37_v17 }
  0xb6   :  { %v39_v20 = vrot.slane %v38_v19, 4 }
  0xb8   :  { %v40_v21 = vadd.f32 %v39_v20, %v38_v19 }
  0xba   :  { %v41_v22 = vrot.slane %v40_v21, 2 }
  0xbc   :  { %v42_v23 = vadd.f32 %v41_v22, %v40_v21 }
  0xbe   :  { %v43_v24 = vrot.slane %v42_v23, 1 }
  0xc0   :  { %v44_v25 = vadd.f32 %v43_v24, %v42_v23 }
  0xc2   :  { %vm46_vm3 = vcmp.lt.f32.partialorder %v44_v25, 0.0 }
  0xc3   :  { %vm47_vm5 = vmand %vm45_vm2, %vm46_vm3 }
  0xc4   :  { %v48_v26 = vsel %vm47_vm5, 0.0, %v44_v25  ;;  %v53_v27 = vsel %vm47_vm5, %v44_v25, 0.0 }
  0xc5   :  { %v54_v28 = vand.u32 2147483647, %v53_v27  ;;  %v55_v29 = vsel %vm49_vm4, %v48_v26, 0.0 }
  0xc6   :  { %v63_v30 = vrot.slane %v55_v29, %v30_v9 }
  0xc7   :  { %v59_v31 = vrot.slane %v54_v28, %v30_v9 }
  0xc9   :  { %v64_v32 = vsel %vm52_vm6, %v59_v31, %v63_v30 }
  0xca   :  { %v66_v33 = vsel %vm65_vm7, %v64_v32, 0.0 }
  0xcb   :  { %67 = vadd.xlane.f32.xlu0 %v66_v33 }
 0x158   :  { %v68_v35 = vpop.xlane.xlu0 %67 }
 0x159   :  { %v73_v36 = vrot.slane %v68_v35, 7  ;;  %v70_v37 = vrot.slane %v68_v35, 1 }
 0x15b   :  { %v75_v38 = vsub.f32 %v68_v35, %v73_v36  ;;  %vm72_vm8 = vcmp.le.f32.partialorder %v68_v35, %v70_v37 }
 0x15d   :  { %v77_v39 = vrot.slane %v75_v38, 1 }
 0x15f   :  { %v79_v40 = vsel %vm72_vm8, %v77_v39, 0.0 }
 0x160   :  { %82 = vperm.xlu1 %103, %v79_v40  }
 0x1df   :  { %v83_v41 = vpop.permute.xlu1 %82 }
 0x1e0   :  { %v85_v42 = vsel %vm49_vm4, %v83_v41, %v48_v26 }
 0x1e1   :  { %86 = vst [vmem:[#allocation2] sm:$0x1] %v85_v42 }
 0x1e2   :  { %120 = shalt.err (!%p117_p4)
}
 0x1e3   :  { %s121_s21 = scalar_lea.hbm %s181_s3, 16 }
 0x1e4   :  { %p122_p5 = scmp.ne.s32.totalorder %s181_s3, %s121_s21  ;;  %p125_p6 = scmp.lt.u32.totalorder %s121_s21, %s181_s3 }
 0x1e6   :  { %p127_p7 = pnand %p125_p6, %p122_p5 }
 0x1e8   :  { %130 = shalt.err (!%p127_p7)
}
 0x1e9   :  { %96 = dma.vmem_to_hbm [thread:$0]  %s94_s2, 16, %s181_s3, [#allocation3]  }
 0x1ea   :  { %131 = dma.done.wait [#allocation3], 16  }
 0x1eb   :  { %132 = vsyncadd [#allocation3], 4294967280 }
 0x1ec   :  { %100 = vsyncpa [#allocation3], 1 }

</bundles_post_ra>
